<compile_context>
chip_gen: v7x
topology: tpu7x:2x2x1
jax: 0.10.0
libtpu: 0.0.40
codegen_flags: <defaults>
</compile_context>

<pallas_src>
from functools import partial

import numpy as np
import jax
import jax.numpy as jnp
from jax import lax
from jax.experimental import pallas as pl
from jax.experimental.pallas import tpu as pltpu

LANE = 128
_HUGE = 1e30        # finite mask value for padded cluster columns (no inf-inf NaNs)


def _round_up(x, m):
    return (x + m - 1) // m * m


def _vmem_capacity_bytes():
    try:
        info = pltpu.get_tpu_info()
        return int(getattr(info, "vmem_capacity_bytes", 64 * 1024 * 1024))
    except Exception:
        return 64 * 1024 * 1024      # conservative (v7x-sized) fallback


def _choose_batch_tile(B, D, Kp, vmem_capacity):
    """Largest 16-aligned batch tile that fits comfortably in VMEM."""
    budget = vmem_capacity // 2                        # headroom for temps/compiler
    resident = 2 * (Kp * D * 2) + 2 * (8 * Kp * 4)     # dbl-buffered bf16 c + f32 ||c||^2
    # dbl-buffered bf16 x tile + f32 soft out + i32 hard out, plus f32 temporaries.
    per_row = 2 * (D * 2) + 2 * (Kp * 4) + 2 * 4 + 4 * (Kp * 4)
    tb = (budget - resident) // per_row
    tb = max(16, min(4096, (tb // 16) * 16))
    # Ensure >= 2 grid steps when the batch allows it (v7x shards "parallel"
    # axes across its 2 TensorCores; near-neutral on 1-TC v5e/v6e).
    if B >= 32:
        tb = min(tb, _round_up((B + 1) // 2, 16))
    # Never pick a tile (much) larger than the batch itself.
    tb = min(tb, max(16, _round_up(B, 16)))
    return tb


def _make_cluster_assignment_kernel(alpha):
    alpha = float(alpha)
    inv_alpha = 1.0 / alpha
    power = (alpha + 1.0) / 2.0

    def kernel(x_ref, c_ref, cn_ref, soft_ref, hard_ref):
        x_bf = x_ref[...]                       # [TB, D]  bf16 batch tile
        x32 = x_bf.astype(jnp.float32)
        c_norm = cn_ref[...]                    # [1, Kp]  f32; padded cols = 1e30

        # MXU cross term (bf16 in, f32 accumulate): cross[b, k] = x[b, :] . c[k, :]
        cross = lax.dot_general(
            x_bf, c_ref[...], (((1,), (1,)), ((), ())),
            preferred_element_type=jnp.float32)            # [TB, Kp]

        x_norm = jnp.sum(x32 * x32, axis=1, keepdims=True)  # [TB, 1]
        # ||x - c||^2 via the matmul identity; clamp cancellation noise.
        norm_sq = jnp.maximum(x_norm + c_norm - 2.0 * cross, 0.0)

        # Student-t numerator.  Padded columns (c_norm = 1e30) collapse to ~0
        # here, so they never affect the denominator or the argmax.
        numerator = pl.reciprocal(1.0 + norm_sq * inv_alpha, approx=True)
        if power != 1.0:                        # trace-time constant
            numerator = numerator ** power

        denom = jnp.sum(numerator, axis=1, keepdims=True)    # [TB, 1]
        soft_ref[...] = numerator * pl.reciprocal(denom, approx=True)

        # Fused hard assignment (first-max index == np.argmax tie-breaking).
        tb, kp = numerator.shape
        col = lax.broadcasted_iota(jnp.int32, (tb, kp), 1)
        row_max = jnp.max(numerator, axis=1, keepdims=True)
        hard_ref[...] = jnp.min(
            jnp.where(numerator == row_max, col, kp),
            axis=1, keepdims=True).astype(jnp.int32)

    return kernel


@partial(jax.jit, static_argnames=("alpha",))
def _cluster_assignment_padded(batch, cluster_centers, *, alpha=1.0):
    """Returns (soft [Bp, Kp] f32, hard [Bp, 1] i32) with Bp >= B, Kp = roundup(K, 128)."""
    B, D = batch.shape
    K, D2 = cluster_centers.shape
    assert D == D2

    Kp = _round_up(K, LANE)                  # lane-dense output / MXU N dimension
    vmem_capacity = _vmem_capacity_bytes()
    TB = _choose_batch_tile(B, D, Kp, vmem_capacity)

    # bf16 batch halves HBM/VMEM traffic; the matmul accumulates in f32.
    x = batch.astype(jnp.bfloat16)
    if B < TB:                               # tiny batch: pad up to one tile (cheap).
        x = jnp.pad(x, ((0, TB - B), (0, 0)))
    Bp = max(B, TB)
    # For B >= TB we do NOT pad: grid = cdiv(B, TB); the ragged last block is
    # read/write-masked by Pallas and rows are independent.

    c = cluster_centers.astype(jnp.bfloat16)
    if Kp != K:
        c = jnp.pad(c, ((0, Kp - K), (0, 0)))
    # ||c||^2 of the *quantized* centers (consistent with the bf16 matmul);
    # padded columns get a huge finite value so their numerator is ~0.
    c_q32 = cluster_centers.astype(jnp.bfloat16).astype(jnp.float32)
    c_norm = jnp.sum(c_q32 * c_q32, axis=1)                     # [K]
    c_norm = jnp.pad(c_norm, (0, Kp - K), constant_values=_HUGE)[None, :]  # [1, Kp]

    vmem_limit = int(min(vmem_capacity * 3 // 4, 100 * 1024 * 1024))

    soft, hard = pl.pallas_call(
        _make_cluster_assignment_kernel(alpha),
        out_shape=(jax.ShapeDtypeStruct((Bp, Kp), jnp.float32),
                   jax.ShapeDtypeStruct((Bp, 1), jnp.int32)),
        grid_spec=pltpu.PrefetchScalarGridSpec(
            num_scalar_prefetch=0,
            grid=(pl.cdiv(Bp, TB),),
            in_specs=[
                pl.BlockSpec((TB, D), lambda i: (i, 0)),   # pipelined batch tile
                pl.BlockSpec((Kp, D), lambda i: (0, 0)),   # centers stay resident
                pl.BlockSpec((1, Kp), lambda i: (0, 0)),   # ||c||^2 stays resident
            ],
            out_specs=[
                pl.BlockSpec((TB, Kp), lambda i: (i, 0)),  # lane-dense soft labels
                pl.BlockSpec((TB, 1), lambda i: (i, 0)),   # fused argmax
            ],
        ),
        compiler_params=pltpu.CompilerParams(
            dimension_semantics=("parallel",),             # TC-sharded on v7x
            vmem_limit_bytes=vmem_limit),
    )(x, c, c_norm)
    return soft, hard


def cluster_assignment(batch, cluster_centers, alpha=1.0):
    """batch: [B, D] f32, cluster_centers: [K, D] f32 -> [B, K] f32 soft assignment."""
    B = batch.shape[0]
    K = cluster_centers.shape[0]
    soft, _ = _cluster_assignment_padded(batch, cluster_centers, alpha=float(alpha))
    return soft[:B, :K]


def xavier_uniform(key, shape):
    # torch.nn.init.xavier_uniform_ on a [fan_out, fan_in]-shaped 2D tensor.
    fan_out, fan_in = shape
    bound = float(np.sqrt(6.0 / (fan_in + fan_out)))
    return jax.random.uniform(key, shape, jnp.float32, -bound, bound)


class ClusterAssignmentJAX:
    def __init__(self, cluster_number, embedding_dimension, alpha=1.0,
                 cluster_centers=None, key=None):
        self.cluster_number = cluster_number
        self.embedding_dimension = embedding_dimension
        self.alpha = alpha
        if cluster_centers is None:
            assert key is not None
            cluster_centers = xavier_uniform(
                key, (cluster_number, embedding_dimension))
        self.cluster_centers = cluster_centers

    def forward(self, batch):
        B = batch.shape[0]
        soft, hard = _cluster_assignment_padded(
            batch, self.cluster_centers, alpha=float(self.alpha))
        soft_np, hard_np = jax.device_get((soft, hard))
        labels = np.asarray(soft_np)[:B, :self.cluster_number]   # numpy view, no device copy
        hard_rows = np.asarray(hard_np)[:B, 0]
        # Side-effect bookkeeping (pure Python, matches the torch module),
        # driven by the argmax that was fused into the kernel.
        self.images_lists = [[] for _ in range(self.cluster_number)]
        for i, k in enumerate(hard_rows.tolist()):
            self.images_lists[int(k)].append(i)
        return labels


if __name__ == "__main__":
    key = jax.random.PRNGKey(0)
    k_centers, k_batch = jax.random.split(key)

    B, D, K = 8, 32, 4
    batch = jax.random.normal(k_batch, (B, D), dtype=jnp.float32)

    mod = ClusterAssignmentJAX(cluster_number=K, embedding_dimension=D,
                               alpha=1.0, key=k_centers)

    out = cluster_assignment(batch, mod.cluster_centers, mod.alpha)
    out = jax.block_until_ready(out)

    # Reference: plain-JAX f32 implementation of the torch math.
    diff = batch[:, None, :] - mod.cluster_centers[None, :, :]
    ns = jnp.sum(diff * diff, axis=2)
    num = (1.0 / (1.0 + ns / mod.alpha)) ** ((mod.alpha + 1.0) / 2.0)
    ref = num / jnp.sum(num, axis=1, keepdims=True)
    # Tolerance loosened for bf16 matmul inputs + approx reciprocals.
    np.testing.assert_allclose(np.asarray(out), np.asarray(ref),
                               rtol=2e-2, atol=2e-3)

    # Exercise the full module path (includes images_lists bookkeeping).
    labels = mod.forward(batch)
    assert labels.shape == (B, K)
    assert sum(len(l) for l in mod.images_lists) == B
    # Bookkeeping must be consistent with the returned soft assignments.
    hard_ref = np.argmax(labels, axis=1)
    for i in range(B):
        assert i in mod.images_lists[int(hard_ref[i])]

    print("KERNEL_OK")
</pallas_src>

<mosaic_0001>
module attributes {stable_mosaic.version = 11 : i64} {
  func.func @kernel(%arg0: i32, %arg1: memref<16x32xbf16, #tpu.memory_space<vmem>>, %arg2: memref<128x32xbf16, #tpu.memory_space<vmem>>, %arg3: memref<1x128xf32, #tpu.memory_space<vmem>>, %arg4: memref<16x128xf32, #tpu.memory_space<vmem>>, %arg5: memref<16x1xi32, #tpu.memory_space<vmem>>) attributes {dimension_semantics = [#tpu.dimension_semantics<parallel>], iteration_bounds = array<i64: 1>, scalar_prefetch = 0 : i64, scratch_operands = 0 : i64, tpu.core_type = #tpu.core_type<tc>, window_params = [{transform_indices = @transform_0, window_bounds = array<i64: 16, 32>}, {pipeline_mode = #tpu.pipeline_mode<synchronous>, transform_indices = @transform_1, window_bounds = array<i64: 128, 32>}, {pipeline_mode = #tpu.pipeline_mode<synchronous>, transform_indices = @transform_2, window_bounds = array<i64: 1, 128>}, {transform_indices = @transform_3, window_bounds = array<i64: 16, 128>}, {transform_indices = @transform_4, window_bounds = array<i64: 16, 1>}]} {
    %c0 = arith.constant 0 : index
    %c0_0 = arith.constant 0 : index
    %0 = vector.load %arg1[%c0, %c0_0] : memref<16x32xbf16, #tpu.memory_space<vmem>>, vector<16x32xbf16>
    %1 = arith.extf %0 : vector<16x32xbf16> to vector<16x32xf32>
    %c0_1 = arith.constant 0 : index
    %c0_2 = arith.constant 0 : index
    %2 = vector.load %arg3[%c0_1, %c0_2] : memref<1x128xf32, #tpu.memory_space<vmem>>, vector<1x128xf32>
    %c0_3 = arith.constant 0 : index
    %c0_4 = arith.constant 0 : index
    %3 = vector.load %arg2[%c0_3, %c0_4] : memref<128x32xbf16, #tpu.memory_space<vmem>>, vector<128x32xbf16>
    %cst = arith.constant dense<0.000000e+00> : vector<16x128xf32>
    %4 = tpu.matmul %0, %3, %cst {dimension_numbers = #tpu.dot_dimension_numbers<[1], [1], [0], [0], [0, 0, 1, 0], [], []>} : vector<16x32xbf16>, vector<128x32xbf16>, vector<16x128xf32> -> vector<16x128xf32>
    %5 = arith.mulf %1, %1 : vector<16x32xf32>
    %cst_5 = arith.constant dense<0.000000e+00> : vector<16xf32>
    %6 = vector.multi_reduction <add>, %5, %cst_5 [1] : vector<16x32xf32> to vector<16xf32>
    %7 = vector.shape_cast %6 : vector<16xf32> to vector<16x1xf32>
    %8 = vector.broadcast %7 : vector<16x1xf32> to vector<16x128xf32>
    %9 = vector.broadcast %2 : vector<1x128xf32> to vector<16x128xf32>
    %10 = arith.addf %8, %9 : vector<16x128xf32>
    %cst_6 = arith.constant 2.000000e+00 : f32
    %11 = vector.broadcast %cst_6 : f32 to vector<16x128xf32>
    %12 = arith.mulf %11, %4 : vector<16x128xf32>
    %13 = arith.subf %10, %12 : vector<16x128xf32>
    %cst_7 = arith.constant 0.000000e+00 : f32
    %14 = vector.broadcast %cst_7 : f32 to vector<16x128xf32>
    %15 = arith.maximumf %13, %14 : vector<16x128xf32>
    %cst_8 = arith.constant 1.000000e+00 : f32
    %16 = vector.broadcast %cst_8 : f32 to vector<16x128xf32>
    %17 = arith.mulf %15, %16 : vector<16x128xf32>
    %cst_9 = arith.constant 1.000000e+00 : f32
    %18 = vector.broadcast %cst_9 : f32 to vector<16x128xf32>
    %19 = arith.addf %18, %17 : vector<16x128xf32>
    %20 = tpu.reciprocal %19 {approx = true} : vector<16x128xf32> -> vector<16x128xf32>
    %cst_10 = arith.constant dense<0.000000e+00> : vector<16xf32>
    %21 = vector.multi_reduction <add>, %20, %cst_10 [1] : vector<16x128xf32> to vector<16xf32>
    %22 = vector.shape_cast %21 : vector<16xf32> to vector<16x1xf32>
    %23 = tpu.reciprocal %22 {approx = true} : vector<16x1xf32> -> vector<16x1xf32>
    %24 = vector.broadcast %23 : vector<16x1xf32> to vector<16x128xf32>
    %25 = arith.mulf %20, %24 : vector<16x128xf32>
    %c0_11 = arith.constant 0 : index
    %c0_12 = arith.constant 0 : index
    %26 = vector.load %arg4[%c0_11, %c0_12] : memref<16x128xf32, #tpu.memory_space<vmem>>, vector<16x128xf32>
    tpu.vector_store %arg4[%c0_11, %c0_12], %25 {strides = array<i32>} : memref<16x128xf32, #tpu.memory_space<vmem>>, vector<16x128xf32>,
    %27 = tpu.iota {dimensions = array<i32: 1>} : vector<16x128xi32>
    %cst_13 = arith.constant dense<0xFF800000> : vector<16xf32>
    %28 = vector.multi_reduction <maximumf>, %20, %cst_13 [1] : vector<16x128xf32> to vector<16xf32>
    %29 = vector.shape_cast %28 : vector<16xf32> to vector<16x1xf32>
    %30 = vector.broadcast %29 : vector<16x1xf32> to vector<16x128xf32>
    %31 = arith.cmpf oeq, %20, %30 : vector<16x128xf32>
    %c128_i32 = arith.constant 128 : i32
    %32 = vector.broadcast %c128_i32 : i32 to vector<16x128xi32>
    %33 = arith.select %31, %27, %32 : vector<16x128xi1>, vector<16x128xi32>
    %cst_14 = arith.constant dense<2147483647> : vector<16xi32>
    %34 = vector.multi_reduction <minsi>, %33, %cst_14 [1] : vector<16x128xi32> to vector<16xi32>
    %35 = vector.shape_cast %34 : vector<16xi32> to vector<16x1xi32>
    %c0_15 = arith.constant 0 : index
    %c0_16 = arith.constant 0 : index
    %36 = vector.load %arg5[%c0_15, %c0_16] : memref<16x1xi32, #tpu.memory_space<vmem>>, vector<16x1xi32>
    tpu.vector_store %arg5[%c0_15, %c0_16], %35 {strides = array<i32>} : memref<16x1xi32, #tpu.memory_space<vmem>>, vector<16x1xi32>,
    return
  }
  func.func @transform_0(%arg0: i32) -> (i32, i32) {
    %c0_i32 = arith.constant 0 : i32
    %c0_i32_0 = arith.constant 0 : i32
    return %arg0, %c0_i32 : i32, i32
  }
  func.func @transform_1(%arg0: i32) -> (i32, i32) {
    %c0_i32 = arith.constant 0 : i32
    %c0_i32_0 = arith.constant 0 : i32
    %c0_i32_1 = arith.constant 0 : i32
    return %c0_i32, %c0_i32_0 : i32, i32
  }
  func.func @transform_2(%arg0: i32) -> (i32, i32) {
    %c0_i32 = arith.constant 0 : i32
    %c0_i32_0 = arith.constant 0 : i32
    %c0_i32_1 = arith.constant 0 : i32
    return %c0_i32, %c0_i32_0 : i32, i32
  }
  func.func @transform_3(%arg0: i32) -> (i32, i32) {
    %c0_i32 = arith.constant 0 : i32
    %c0_i32_0 = arith.constant 0 : i32
    return %arg0, %c0_i32 : i32, i32
  }
  func.func @transform_4(%arg0: i32) -> (i32, i32) {
    %c0_i32 = arith.constant 0 : i32
    %c0_i32_0 = arith.constant 0 : i32
    return %arg0, %c0_i32 : i32, i32
  }
}

</mosaic_0001>

<bundles_post_ra>
// kernel: _cluster_assignment_padded.1
= control target key start
LH: loop header
LB: loop body
LE: loop exit
PB: predicated region body
PF: predicated region fallthrough
CT: control target
= control target key end

     0   :  { %v337_v1 = vmov 0.0   ;;  %vm84_vm0 = vcmask 261120   ;;  %vm338_vm1 = vmmov 0   ;;  %s426_s0 = inlined_call_operand.vmem [shape: bf16[16,32], index: 0, kind: input, shape index: {}]   ;;  %s427_s1 = inlined_call_operand.vmem [shape: bf16[128,32], index: 1, kind: input, shape index: {}]   ;;  %s428_s2 = inlined_call_operand.vmem [shape: f32[1,128], index: 2, kind: input, shape index: {}]   ;;  %s429_s3 = inlined_call_operand.hbm [shape: f32[16,128], index: 3, kind: output, shape index: {0}]   ;;  %s430_s4 = inlined_call_operand.vmem [shape: s32[16,1], index: 4, kind: output, shape index: {1}]  }
   0x1   :  { %v295_v0 = vld [vmem:[%s427_s1] sm:$0xff]   ;;  %270 = vmatprep.subr.bf16.mxu0 %v337_v1  ;;  %v296_v3 = vld [vmem:[%s427_s1 + $0x8] sm:$0xff]   ;;  %286 = vmatprep.mubr.msk.bf16.mxu0 %vm338_vm1, %v337_v1 }
   0x2   :  { %v89_v2 = vsel %vm84_vm0, %v295_v0, 0  ;;  %v92_v4 = vsel %vm84_vm0, %v296_v3, 0  ;;  %v18_v5 = vld [vmem:[%s426_s0] sm:$0xff]  }
   0x3   :  { %271 = vmatpush3.bf16.xpose.msra.mxu0 %v89_v2  ;;  %v20_v6 = vunpack.c.l.bf16 %v18_v5  ;;  %v21_v7 = vunpack.c.h.bf16 %v18_v5 }
   0x4   :  { %272 = vmatprep.subr.bf16.mxu0 %v337_v1 }
   0x5   :  { %10 = vsyncpa [#allocation3], 0  ;;  %v153_v8 = vmul.f32 %v20_v6, %v20_v6  ;;  %v154_v9 = vmul.f32 %v21_v7, %v21_v7  ;;  %v297_v10 = vld [vmem:[%s427_s1 + $0x10] sm:$0xff]   ;;  %v298_v14 = vld [vmem:[%s427_s1 + $0x18] sm:$0xff]   ;;  %v189_v43 = vlaneseq }
   0x6   :  { %v95_v13 = vsel %vm84_vm0, %v297_v10, 0  ;;  %v98_v15 = vsel %vm84_vm0, %v298_v14, 0  ;;  %v299_v16 = vld [vmem:[%s427_s1 + $0x20] sm:$0xff]   ;;  %v300_v18 = vld [vmem:[%s427_s1 + $0x28] sm:$0xff]   ;;  %v301_v20 = vld [vmem:[%s427_s1 + $0x30] sm:$0xff]  }
   0x7   :  { %v155_v11 = vsel %vm84_vm0, %v153_v8, 0.0  ;;  %v158_v12 = vsel %vm84_vm0, %v154_v9, 0.0  ;;  %v101_v17 = vsel %vm84_vm0, %v299_v16, 0  ;;  %v104_v19 = vsel %vm84_vm0, %v300_v18, 0  ;;  %v302_v22 = vld [vmem:[%s427_s1 + $0x38] sm:$0xff]   ;;  %s339_s1 = smov [#allocation2]  }
   0x8   :  { %156 = vadd.xlane.f32.xlu0 %v155_v11  ;;  %v107_v21 = vsel %vm84_vm0, %v301_v20, 0  ;;  %v110_v23 = vsel %vm84_vm0, %v302_v22, 0  ;;  %v260_v25 = vld [vmem:[%s428_s2] ss:$0 sm:$0xff]  ;;  %v190_v44 = vand.u32 127, %v189_v43  ;;  %s235_s2 = sshll.u32 %s339_s1, 4  ;;  %s236_s2 = int_to_ptr.vmem [resolvable:$true] %s235_s2 }
   0x9   :  { %s313_s8 = scalar_lea.vmem %s236_s2, 256  ;;  %p318_p1 = scmp.lt.s32.totalorder %s236_s2, %s236_s2 }
   0xa   :  { %p314_p0 = scmp.ne.s32.totalorder %s236_s2, %s313_s8  ;;  %p319_p2 = scmp.lt.s32.totalorder %s313_s8, %s313_s8 }
   0xb   :  { %273 = vmatpush3.bf16.xpose.msra.mxu0 %v92_v4 }
   0xc   :  { %274 = vmatprep.subr.bf16.mxu0 %v337_v1  ;;  %159 = vadd.xlane.f32.xlu0 %v158_v12  ;;  %p320_p3 = por %p319_p2, %p318_p1 }
   0xe   :  { %p321_p4 = pnand %p320_p3, %p314_p0 }
  0x13   :  { %275 = vmatpush3.bf16.xpose.msra.mxu0 %v95_v13 }
  0x14   :  { %276 = vmatprep.subr.bf16.mxu0 %v337_v1 }
  0x1b   :  { %277 = vmatpush3.bf16.xpose.msra.mxu0 %v98_v15 }
  0x1c   :  { %278 = vmatprep.subr.bf16.mxu0 %v337_v1 }
  0x23   :  { %279 = vmatpush3.bf16.xpose.msra.mxu0 %v101_v17 }
  0x24   :  { %280 = vmatprep.subr.bf16.mxu0 %v337_v1 }
  0x2b   :  { %281 = vmatpush3.bf16.xpose.msra.mxu0 %v104_v19 }
  0x2c   :  { %282 = vmatprep.subr.bf16.mxu0 %v337_v1 }
  0x33   :  { %283 = vmatpush3.bf16.xpose.msra.mxu0 %v107_v21 }
  0x34   :  { %284 = vmatprep.subr.bf16.mxu0 %v337_v1 }
  0x3b   :  { %285 = vmatpush3.bf16.xpose.msra.mxu0 %v110_v23 }
  0x42   :  { %287 = vmatmul.mubr.msk.bf16.vlgmr.msra.gmra.mrb[0].mxu0 %vm84_vm0, %v18_v5 }
  0x95   :  { %v157_v24 = vpop.xlane.xlu0 %156 }
  0x96   :  { %v167_v27 = vadd.f32 %v260_v25, %v157_v24 }
  0x99   :  { %v160_v26 = vpop.xlane.xlu0 %159 }
  0x9a   :  { %v168_v31 = vadd.f32 %v260_v25, %v160_v26 }
 0x115   :  { %v146_v28 = vpop.f32.mrb[0].mxu0 }
 0x116   :  { %v169_v29 = vmul.f32 2.0, %v146_v28  ;;  %v288_v30 = vpop.f32.mrb[1].mxu0 }
 0x117   :  { %v149_v32 = vpop.f32.mrb[2].mxu0 }
 0x118   :  { %v171_v33 = vsub.f32 %v167_v27, %v169_v29  ;;  %v170_v34 = vmul.f32 2.0, %v149_v32  ;;  %v289_v35 = vpop.f32.mrb[3].mxu0 }
 0x11a   :  { %v173_v36 = vmax.f32 %v171_v33, 0.0  ;;  %v172_v37 = vsub.f32 %v168_v31, %v170_v34 }
 0x11c   :  { %v175_v38 = vadd.f32 1.0, %v173_v36  ;;  %v174_v39 = vmax.f32 %v172_v37, 0.0 }
 0x11e   :  { %305 = vrcp.f32 %v175_v38  ;;  %v176_v40 = vadd.f32 1.0, %v174_v39 }
 0x120   :  { %307 = vrcp.f32 %v176_v40 }
 0x128   :  { %v306_v41 = vpop.eup %305 }
 0x129   :  { %191 = vmax.xlane.f32.xlu1 %v306_v41 }
 0x12a   :  { %v308_v42 = vpop.eup %307 }
 0x12d   :  { %193 = vmax.xlane.f32.xlu1 %v308_v42 }
 0x1b6   :  { %v192_v45 = vpop.xlane.xlu1 %191 }
 0x1b7   :  { %vm195_vm2 = vcmp.eq.f32.partialorder %v306_v41, %v192_v45 }
 0x1b8   :  { %v197_v46 = vsel %vm195_vm2, %v190_v44, 128 }
 0x1b9   :  { %v200_v47 = vshra.s32 %v197_v46, 16  ;;  %v199_v53 = vand.u32 65535, %v197_v46 }
 0x1ba   :  { %v194_v48 = vpop.xlane.xlu1 %193 }
 0x1bb   :  { %vm196_vm3 = vcmp.eq.f32.partialorder %v308_v42, %v194_v48  ;;  %v202_v49 = vcvt.s32.f32 %v200_v47  ;;  %v201_v56 = vcvt.s32.f32 %v199_v53 }
 0x1bc   :  { %v198_v50 = vsel %vm196_vm3, %v190_v44, 128 }
 0x1bd   :  { %203 = vmin.xlane.f32.xlu0 %v202_v49  ;;  %v214_v51 = vshra.s32 %v198_v50, 16  ;;  %v213_v54 = vand.u32 65535, %v198_v50 }
 0x1bf   :  { %v216_v52 = vcvt.s32.f32 %v214_v51  ;;  %v215_v60 = vcvt.s32.f32 %v213_v54 }
 0x1c1   :  { %179 = vadd.xlane.f32.xlu0 %v306_v41  ;;  %217 = vmin.xlane.f32.xlu1 %v216_v52 }
 0x1c5   :  { %181 = vadd.xlane.f32.xlu1 %v308_v42 }
 0x24a   :  { %v204_v55 = vpop.xlane.xlu0 %203 }
 0x24b   :  { %vm205_vm4 = vcmp.eq.f32.partialorder %v202_v49, %v204_v55 }
 0x24c   :  { %v206_v57 = vsel %vm205_vm4, %v201_v56, inf }
 0x24d   :  { %207 = vmin.xlane.f32.xlu0 %v206_v57 }
 0x24e   :  { %v218_v58 = vpop.xlane.xlu1 %217  ;;  %v180_v59 = vpop.xlane.xlu0 %179 }
 0x24f   :  { %309 = vrcp.f32 %v180_v59  ;;  %vm219_vm5 = vcmp.eq.f32.partialorder %v216_v52, %v218_v58 }
 0x250   :  { %v220_v61 = vsel %vm219_vm5, %v215_v60, inf }
 0x251   :  { %221 = vmin.xlane.f32.xlu1 %v220_v61 }
 0x252   :  { %v182_v62 = vpop.xlane.xlu1 %181 }
 0x253   :  { %311 = vrcp.f32 %v182_v62 }
 0x259   :  { %v310_v63 = vpop.eup %309 }
 0x25a   :  { %v185_v0 = vmul.f32 %v310_v63, %v306_v41 }
 0x25c   :  { %187 = vst [vmem:[#allocation2] sm:$0xff] %v185_v0 }
 0x25d   :  { %v312_v1 = vpop.eup %311 }
 0x25e   :  { %v186_v2 = vmul.f32 %v312_v1, %v308_v42 }
 0x260   :  { %188 = vst [vmem:[#allocation2 + $0x8] sm:$0xff] %v186_v2 }
 0x261   :  { %324 = shalt.err (!%p321_p4)
}
 0x262   :  { %s325_s11 = scalar_lea.hbm %s429_s3, 256 }
 0x263   :  { %p326_p5 = scmp.ne.s32.totalorder %s429_s3, %s325_s11  ;;  %p329_p6 = scmp.lt.u32.totalorder %s325_s11, %s429_s3 }
 0x265   :  { %p331_p7 = pnand %p329_p6, %p326_p5 }
 0x267   :  { %334 = shalt.err (!%p331_p7)
}
 0x268   :  { %s340_s16 = smov 128   ;;  %s341_s17 = smov 8   ;;  %v210_v3 = vcvt.f32.s32 %v204_v55  ;;  %v224_v6 = vcvt.f32.s32 %v218_v58  ;;  %vm227_vm6 = vcmask 7168  }
 0x269   :  { %241 = dma.vmem_to_hbm [thread:$0]  %s236_s2, 256, %s429_s3, [#allocation3], %s340_s16, %s340_s16, %s341_s17  }
 0x26a   :  { %v211_v5 = vshll.u32 %v210_v3, 16  ;;  %v225_v10 = vshll.u32 %v224_v6, 16 }
 0x2da   :  { %v208_v4 = vpop.xlane.xlu0 %207 }
 0x2db   :  { %v209_v7 = vcvt.f32.s32 %v208_v4 }
 0x2dd   :  { %v212_v8 = vadd.s32 %v211_v5, %v209_v7 }
 0x2de   :  { %v222_v9 = vpop.xlane.xlu1 %221 }
 0x2df   :  { %228 = vst.msk [vmem:[%s430_s4] sm:$0xff] %vm227_vm6, %v212_v8  ;;  %v223_v11 = vcvt.f32.s32 %v222_v9 }
 0x2e1   :  { %v226_v12 = vadd.s32 %v225_v10, %v223_v11 }
 0x2e3   :  { %229 = vst.msk [vmem:[%s430_s4 + $0x8] sm:$0xff] %vm227_vm6, %v226_v12 }
 0x2e4   :  { %335 = dma.done.wait [#allocation3], 256  }
 0x2e5   :  { %336 = vsyncadd [#allocation3], 4294967040 }
 0x2e6   :  { %249 = vsyncpa [#allocation3], 1 }

</bundles_post_ra>
